<compile_context>
chip_gen: v6e
topology: v6e:2x2x1
jax: 0.10.0
libtpu: 0.0.40
codegen_flags: <defaults>
</compile_context>

<pallas_src>
import functools

import jax
import jax.numpy as jnp
from jax.experimental import pallas as pl
from jax.experimental.pallas import tpu as pltpu


def _round_up(x: int, m: int) -> int:
    return ((x + m - 1) // m) * m


def _ffn_kernel(x_ref, w1_ref, b1_ref, w2_ref, b2_ref, o_ref):
    # x_ref : (TM, D_in)   compute dtype (bf16 by default)
    # w1_ref: (D_in, H)    compute dtype
    # b1_ref: (1, H)       f32
    # w2_ref: (H, C_pad)   compute dtype (zero-padded columns)
    # b2_ref: (1, C_pad)   f32 (zero-padded)
    # o_ref : (TM, C_pad)  f32
    h = jnp.dot(x_ref[...], w1_ref[...], preferred_element_type=jnp.float32)
    h = h + b1_ref[...]
    h = jnp.maximum(h, 0.0)                       # relu (dropout p=0 -> identity)
    h = h.astype(w2_ref.dtype)                    # feed MXU its native dtype
    out = jnp.dot(h, w2_ref[...], preferred_element_type=jnp.float32)
    out = out + b2_ref[...]
    o_ref[...] = out.astype(o_ref.dtype)


@functools.partial(jax.jit, static_argnames=("compute_dtype", "tm"))
def feed_forward_network(x, params, *, compute_dtype=jnp.bfloat16, tm=512):
    """x: (..., input_size) -> (..., output_size)."""
    w1, b1, w2, b2 = params["w1"], params["b1"], params["w2"], params["b2"]
    d_in, hidden = w1.shape
    out_dim = w2.shape[1]

    lead_shape = x.shape[:-1]
    m = 1
    for d in lead_shape:
        m *= d
    x2d = x.reshape(m, d_in)

    # Row tiling: TM is a multiple of 8 (f32 sublane), capped at `tm`.
    tile_m = min(tm, _round_up(m, 8))
    m_pad = _round_up(m, tile_m)
    # Lane-dense output: pad num_classes/output_size up to a multiple of 128.
    c_pad = _round_up(out_dim, 128)

    if m_pad != m:
        x2d = jnp.pad(x2d, ((0, m_pad - m), (0, 0)))
    w2p = jnp.pad(w2, ((0, 0), (0, c_pad - out_dim))) if c_pad != out_dim else w2
    b2p = jnp.pad(b2, ((0, c_pad - out_dim),)) if c_pad != out_dim else b2

    # Cast matmul operands once in the wrapper (no per-step astype in-kernel).
    x2d = x2d.astype(compute_dtype)
    w1c = w1.astype(compute_dtype)
    w2c = w2p.astype(compute_dtype)
    b1r = b1.reshape(1, hidden).astype(jnp.float32)
    b2r = b2p.reshape(1, c_pad).astype(jnp.float32)

    grid = (m_pad // tile_m,)

    bytes_accessed = (
        x2d.size * x2d.dtype.itemsize
        + w1c.size * w1c.dtype.itemsize
        + w2c.size * w2c.dtype.itemsize
        + b1r.size * 4 + b2r.size * 4
        + m_pad * c_pad * 4
    )
    cost = pl.CostEstimate(
        flops=2 * m_pad * d_in * hidden + 2 * m_pad * hidden * c_pad,
        transcendentals=0,
        bytes_accessed=bytes_accessed,
    )

    out2d = pl.pallas_call(
        _ffn_kernel,
        out_shape=jax.ShapeDtypeStruct((m_pad, c_pad), jnp.float32),
        grid=grid,
        in_specs=[
            pl.BlockSpec((tile_m, d_in), lambda i: (i, 0)),   # x row tile
            pl.BlockSpec((d_in, hidden), lambda i: (0, 0)),   # w1 (resident)
            pl.BlockSpec((1, hidden), lambda i: (0, 0)),      # b1 (resident)
            pl.BlockSpec((hidden, c_pad), lambda i: (0, 0)),  # w2 (resident)
            pl.BlockSpec((1, c_pad), lambda i: (0, 0)),       # b2 (resident)
        ],
        out_specs=pl.BlockSpec((tile_m, c_pad), lambda i: (i, 0)),
        compiler_params=pltpu.CompilerParams(
            dimension_semantics=("parallel",),
            vmem_limit_bytes=64 * 1024 * 1024,
        ),
        cost_estimate=cost,
    )(x2d, w1c, b1r, w2c, b2r)

    out = out2d[:m, :out_dim]
    return out.reshape(*lead_shape, out_dim)


def init_params(key, input_size, hidden_size, output_size):
    """Synthetic params with PyTorch nn.Linear-style init; weights stored (in, out)."""
    k0, k1, k2, k3 = jax.random.split(key, 4)
    bound1 = 1.0 / (input_size ** 0.5)
    bound2 = 1.0 / (hidden_size ** 0.5)
    return {
        "w1": jax.random.uniform(k0, (input_size, hidden_size), jnp.float32,
                                 -bound1, bound1),
        "b1": jax.random.uniform(k1, (hidden_size,), jnp.float32, -bound1, bound1),
        "w2": jax.random.uniform(k2, (hidden_size, output_size), jnp.float32,
                                 -bound2, bound2),
        "b2": jax.random.uniform(k3, (output_size,), jnp.float32, -bound2, bound2),
    }


def reference_forward(x, params, compute_dtype=jnp.bfloat16):
    """Pure-JAX reference with the same dtype handling as the kernel."""
    w1 = params["w1"].astype(compute_dtype)
    w2 = params["w2"].astype(compute_dtype)
    h = jnp.dot(x.astype(compute_dtype), w1,
                preferred_element_type=jnp.float32) + params["b1"]
    h = jnp.maximum(h, 0.0)
    out = jnp.dot(h.astype(compute_dtype), w2,
                  preferred_element_type=jnp.float32) + params["b2"]
    return out


if __name__ == "__main__":
    B, S = 2, 8
    INPUT_SIZE = 32
    HIDDEN_SIZE = 64
    OUTPUT_SIZE = 8

    key = jax.random.PRNGKey(0)
    k_x, k_p = jax.random.split(key)

    x = jax.random.normal(k_x, (B, S, INPUT_SIZE), jnp.float32)
    params = init_params(k_p, INPUT_SIZE, HIDDEN_SIZE, OUTPUT_SIZE)

    out = feed_forward_network(x, params)
    out = jax.block_until_ready(out)

    ref = reference_forward(x, params)
    assert out.shape == (B, S, OUTPUT_SIZE), out.shape
    assert jnp.allclose(out, ref, atol=1e-2, rtol=1e-2), "mismatch vs reference"

    print("KERNEL_OK")
</pallas_src>

<mosaic_0001>
module attributes {stable_mosaic.version = 11 : i64} {
  func.func @_ffn_kernel(%arg0: i32, %arg1: memref<16x32xbf16, #tpu.memory_space<vmem>>, %arg2: memref<32x64xbf16, #tpu.memory_space<vmem>>, %arg3: memref<1x64xf32, #tpu.memory_space<vmem>>, %arg4: memref<64x128xbf16, #tpu.memory_space<vmem>>, %arg5: memref<1x128xf32, #tpu.memory_space<vmem>>, %arg6: memref<16x128xf32, #tpu.memory_space<vmem>>) attributes {dimension_semantics = [#tpu.dimension_semantics<parallel>], iteration_bounds = array<i64: 1>, scalar_prefetch = 0 : i64, scratch_operands = 0 : i64, tpu.core_type = #tpu.core_type<tc>, window_params = [{transform_indices = @transform_0, window_bounds = array<i64: 16, 32>}, {pipeline_mode = #tpu.pipeline_mode<synchronous>, transform_indices = @transform_1, window_bounds = array<i64: 32, 64>}, {pipeline_mode = #tpu.pipeline_mode<synchronous>, transform_indices = @transform_2, window_bounds = array<i64: 1, 64>}, {pipeline_mode = #tpu.pipeline_mode<synchronous>, transform_indices = @transform_3, window_bounds = array<i64: 64, 128>}, {pipeline_mode = #tpu.pipeline_mode<synchronous>, transform_indices = @transform_4, window_bounds = array<i64: 1, 128>}, {transform_indices = @transform_5, window_bounds = array<i64: 16, 128>}]} {
    %c0 = arith.constant 0 : index
    %c0_0 = arith.constant 0 : index
    %0 = vector.load %arg1[%c0, %c0_0] : memref<16x32xbf16, #tpu.memory_space<vmem>>, vector<16x32xbf16>
    %c0_1 = arith.constant 0 : index
    %c0_2 = arith.constant 0 : index
    %1 = vector.load %arg2[%c0_1, %c0_2] : memref<32x64xbf16, #tpu.memory_space<vmem>>, vector<32x64xbf16>
    %cst = arith.constant dense<0.000000e+00> : vector<16x64xf32>
    %2 = tpu.matmul %0, %1, %cst {dimension_numbers = #tpu.dot_dimension_numbers<[1], [0], [0], [1], [0, 0, 1, 1], [], []>} : vector<16x32xbf16>, vector<32x64xbf16>, vector<16x64xf32> -> vector<16x64xf32>
    %c0_3 = arith.constant 0 : index
    %c0_4 = arith.constant 0 : index
    %3 = vector.load %arg3[%c0_3, %c0_4] : memref<1x64xf32, #tpu.memory_space<vmem>>, vector<1x64xf32>
    %4 = vector.broadcast %3 : vector<1x64xf32> to vector<16x64xf32>
    %5 = arith.addf %2, %4 : vector<16x64xf32>
    %cst_5 = arith.constant 0.000000e+00 : f32
    %6 = vector.broadcast %cst_5 : f32 to vector<16x64xf32>
    %7 = arith.maximumf %5, %6 : vector<16x64xf32>
    %8 = arith.truncf %7 : vector<16x64xf32> to vector<16x64xbf16>
    %c0_6 = arith.constant 0 : index
    %c0_7 = arith.constant 0 : index
    %9 = vector.load %arg4[%c0_6, %c0_7] : memref<64x128xbf16, #tpu.memory_space<vmem>>, vector<64x128xbf16>
    %cst_8 = arith.constant dense<0.000000e+00> : vector<16x128xf32>
    %10 = tpu.matmul %8, %9, %cst_8 {dimension_numbers = #tpu.dot_dimension_numbers<[1], [0], [0], [1], [0, 0, 1, 1], [], []>} : vector<16x64xbf16>, vector<64x128xbf16>, vector<16x128xf32> -> vector<16x128xf32>
    %c0_9 = arith.constant 0 : index
    %c0_10 = arith.constant 0 : index
    %11 = vector.load %arg5[%c0_9, %c0_10] : memref<1x128xf32, #tpu.memory_space<vmem>>, vector<1x128xf32>
    %12 = vector.broadcast %11 : vector<1x128xf32> to vector<16x128xf32>
    %13 = arith.addf %10, %12 : vector<16x128xf32>
    %c0_11 = arith.constant 0 : index
    %c0_12 = arith.constant 0 : index
    %14 = vector.load %arg6[%c0_11, %c0_12] : memref<16x128xf32, #tpu.memory_space<vmem>>, vector<16x128xf32>
    tpu.vector_store %arg6[%c0_11, %c0_12], %13 {strides = array<i32>} : memref<16x128xf32, #tpu.memory_space<vmem>>, vector<16x128xf32>,
    return
  }
  func.func @transform_0(%arg0: i32) -> (i32, i32) {
    %c0_i32 = arith.constant 0 : i32
    %c0_i32_0 = arith.constant 0 : i32
    return %arg0, %c0_i32 : i32, i32
  }
  func.func @transform_1(%arg0: i32) -> (i32, i32) {
    %c0_i32 = arith.constant 0 : i32
    %c0_i32_0 = arith.constant 0 : i32
    %c0_i32_1 = arith.constant 0 : i32
    return %c0_i32, %c0_i32_0 : i32, i32
  }
  func.func @transform_2(%arg0: i32) -> (i32, i32) {
    %c0_i32 = arith.constant 0 : i32
    %c0_i32_0 = arith.constant 0 : i32
    %c0_i32_1 = arith.constant 0 : i32
    return %c0_i32, %c0_i32_0 : i32, i32
  }
  func.func @transform_3(%arg0: i32) -> (i32, i32) {
    %c0_i32 = arith.constant 0 : i32
    %c0_i32_0 = arith.constant 0 : i32
    %c0_i32_1 = arith.constant 0 : i32
    return %c0_i32, %c0_i32_0 : i32, i32
  }
  func.func @transform_4(%arg0: i32) -> (i32, i32) {
    %c0_i32 = arith.constant 0 : i32
    %c0_i32_0 = arith.constant 0 : i32
    %c0_i32_1 = arith.constant 0 : i32
    return %c0_i32, %c0_i32_0 : i32, i32
  }
  func.func @transform_5(%arg0: i32) -> (i32, i32) {
    %c0_i32 = arith.constant 0 : i32
    %c0_i32_0 = arith.constant 0 : i32
    return %arg0, %c0_i32 : i32, i32
  }
}

</mosaic_0001>

<bundles_post_ra>
// kernel: feed_forward_network.1
= control target key start
LH: loop header
LB: loop body
LE: loop exit
PB: predicated region body
PF: predicated region fallthrough
CT: control target
= control target key end

     0   :  { %v237_v0 = vmov 0.0   ;;  %vm238_vm0 = vmmov 0   ;;  %vm51_vm1 = vcmask 261120   ;;  %vm138_vm2 = vcmask 523264   ;;  %s302_s1 = inlined_call_operand.vmem [shape: bf16[32,64], index: 1, kind: input, shape index: {}]   ;;  %s303_s3 = inlined_call_operand.vmem [shape: bf16[64,128], index: 3, kind: input, shape index: {}]   ;;  %s304_s0 = inlined_call_operand.vmem [shape: bf16[16,32], index: 0, kind: input, shape index: {}]   ;;  %s305_s2 = inlined_call_operand.vmem [shape: f32[1,64], index: 2, kind: input, shape index: {}]   ;;  %s306_s4 = inlined_call_operand.vmem [shape: f32[1,128], index: 4, kind: input, shape index: {}]   ;;  %s307_s5 = inlined_call_operand.vmem [shape: f32[16,128], index: 5, kind: output, shape index: {}]  }
   0x1   :  { %208 = vmatprep.subr.bf16.mxu0 %v237_v0  ;;  %v230_v1 = vld [vmem:[%s302_s1 + $0x8] sm:$0xff]   ;;  %212 = vmatprep.mubr.msk.bf16.mxu0 %vm238_vm0, %v237_v0  ;;  %v231_v2 = vld [vmem:[%s302_s1] sm:$0xff]   ;;  %v233_v3 = vld [vmem:[%s303_s3 + $0x18] sm:$0xff]  }
   0x2   :  { %216 = vmatprep.subr.bf16.mxu1 %v237_v0  ;;  %224 = vmatprep.mubr.msk.bf16.mxu1 %vm238_vm0, %v237_v0  ;;  %v232_v4 = vld [vmem:[%s304_s0] sm:$0xff]   ;;  %v234_v5 = vld [vmem:[%s303_s3 + $0x10] sm:$0xff]   ;;  %v235_v6 = vld [vmem:[%s303_s3 + $0x8] sm:$0xff]  }
   0x3   :  { %209 = vmatpush3.bf16.msra.mxu0 %v230_v1  ;;  %217 = vmatpush3.bf16.msra.mxu1 %v233_v3  ;;  %v236_v7 = vld [vmem:[%s303_s3] sm:$0xff]  }
   0x4   :  { %210 = vmatprep.subr.bf16.mxu0 %v237_v0  ;;  %218 = vmatprep.subr.bf16.mxu1 %v237_v0  ;;  %v189_v8 = vld [vmem:[%s305_s2] ss:$0 sm:$0xff] }
   0x5   :  { %v194_v18 = vld [vmem:[%s306_s4] ss:$0 sm:$0xff] }
   0x7   :  { %211 = vmatpush3.bf16.msra.mxu0 %v231_v2  ;;  %219 = vmatpush3.bf16.msra.mxu1 %v234_v5 }
   0x8   :  { %220 = vmatprep.subr.bf16.mxu1 %v237_v0 }
   0xa   :  { %213 = vmatmul.mubr.msk.bf16.vlgmr.msra.gmra.mxu0 %vm51_vm1, %v232_v4 }
   0xb   :  { %221 = vmatpush3.bf16.msra.mxu1 %v235_v6 }
   0xc   :  { %222 = vmatprep.subr.bf16.mxu1 %v237_v0 }
   0xf   :  { %223 = vmatpush3.bf16.msra.mxu1 %v236_v7 }
  0xca   :  { %v89_v9 = vpop.f32.mrf.mxu0 }
  0xcb   :  { %v90_v11 = vadd.f32 %v189_v8, %v89_v9 }
  0xcc   :  { %v214_v10 = vpop.f32.mrf.mxu0 }
  0xcd   :  { %v96_v15 = vmax.f32 %v90_v11, 0.0 }
  0xce   :  { %v92_v12 = vpop.f32.mrf.mxu0 }
  0xcf   :  { %v93_v13 = vadd.f32 %v189_v8, %v92_v12 }
  0xd0   :  { %v215_v14 = vpop.f32.mrf.mxu0 }
  0xd1   :  { %v97_v16 = vmax.f32 %v93_v13, 0.0 }
  0xd3   :  { %v98_v17 = vpack.c.bf16 %v97_v16, %v96_v15 }
  0xd5   :  { %225 = vmatmul.mubr.msk.bf16.vlgmr.msra.gmra.mxu1 %vm138_vm2, %v98_v17 }
 0x195   :  { %v176_v19 = vpop.f32.mrf.mxu1 }
 0x196   :  { %v177_v20 = vadd.f32 %v194_v18, %v176_v19 }
 0x197   :  { %v226_v21 = vpop.f32.mrf.mxu1 }
 0x198   :  { %183 = vst [vmem:[%s307_s5] sm:$0xff] %v177_v20 }
 0x199   :  { %v179_v22 = vpop.f32.mrf.mxu1 }
 0x19a   :  { %v180_v23 = vadd.f32 %v194_v18, %v179_v22 }
 0x19b   :  { %v227_v24 = vpop.f32.mrf.mxu1 }
 0x19c   :  { %184 = vst [vmem:[%s307_s5 + $0x8] sm:$0xff] %v180_v23 }

</bundles_post_ra>
